<compile_context>
chip_gen: v7x
topology: tpu7x:2x2x1
jax: 0.10.0
libtpu: 0.0.40
codegen_flags: <defaults>
</compile_context>

<pallas_src>
import math

import jax
import jax.numpy as jnp
from jax.experimental import pallas as pl
from jax.experimental.pallas import tpu as pltpu

_LANES = 128                       # lane-dense last dim (exactly one vreg lane width)
_TARGET_BLOCK_BYTES = 4 * 1024 * 1024   # ~4 MiB per block (f32) -> ~86% of roofline


def _h_swish_kernel(x_ref, o_ref):
    # Widen to f32 for the math (HBM traffic is unchanged; VPU has slack).
    x = x_ref[...].astype(jnp.float32)
    # relu6(x + 3) / 6  ==  clamp(x + 3, 0, 6) * (1/6)
    hs = jnp.minimum(jnp.maximum(x + 3.0, 0.0), 6.0) * (1.0 / 6.0)
    o_ref[...] = (x * hs).astype(o_ref.dtype)


def h_swish(x: jax.Array) -> jax.Array:
    """Hard-swish, elementwise. Accepts any shape / floating dtype."""
    orig_shape = x.shape
    n = math.prod(orig_shape) if x.ndim > 0 else 1
    if n == 0:
        return x

    x_flat = x.reshape(-1)

    # Pad only to the next multiple of 128 lanes (<= 127 extra elements).
    rem = n % _LANES
    if rem:
        x_flat = jnp.pad(x_flat, (0, _LANES - rem))
    padded = x_flat.shape[0]
    rows = padded // _LANES
    x2d = x_flat.reshape(rows, _LANES)

    itemsize = jnp.dtype(x.dtype).itemsize

    # Rows per block: ~4 MiB of the I/O dtype, multiple of 8 sublanes.
    tm_max = max(8, (_TARGET_BLOCK_BYTES // (_LANES * itemsize)) // 8 * 8)
    tm = rows if rows <= tm_max else tm_max
    grid = (pl.cdiv(rows, tm),)   # ragged last block is masked by Pallas

    out2d = pl.pallas_call(
        _h_swish_kernel,
        out_shape=jax.ShapeDtypeStruct((rows, _LANES), x.dtype),
        grid_spec=pl.GridSpec(
            grid=grid,
            in_specs=[pl.BlockSpec((tm, _LANES), lambda i: (i, 0))],
            out_specs=pl.BlockSpec((tm, _LANES), lambda i: (i, 0)),
        ),
        compiler_params=pltpu.CompilerParams(
            dimension_semantics=("parallel",),       # lets v7x split tiles over 2 TCs
            vmem_limit_bytes=32 * 1024 * 1024,       # 4 bufs x 4 MiB fits everywhere
        ),
        cost_estimate=pl.CostEstimate(
            flops=5 * padded,
            transcendentals=0,
            bytes_accessed=2 * padded * itemsize,
        ),
    )(x2d)

    out = out2d.reshape(-1)
    if rem:
        out = out[:n]
    return out.reshape(orig_shape)


def h_swish_ref(x: jax.Array) -> jax.Array:
    """Pure-JAX reference matching the PyTorch module (computed in f32)."""
    xf = x.astype(jnp.float32)
    return (xf * (jnp.clip(xf + 3.0, 0.0, 6.0) / 6.0)).astype(x.dtype)


if __name__ == "__main__":
    key = jax.random.PRNGKey(0)
    k1, k2, k3, k4 = jax.random.split(key, 4)

    # Small NCHW input, same convention as the PyTorch module.
    x_small = jax.random.normal(k1, (2, 4, 16, 16), dtype=jnp.float32) * 4.0
    y_small = jax.block_until_ready(h_swish(x_small))
    assert y_small.shape == x_small.shape and y_small.dtype == x_small.dtype
    assert jnp.allclose(y_small, h_swish_ref(x_small), atol=1e-6, rtol=1e-6), \
        "mismatch vs reference (small f32)"

    # Odd-sized input: exercises the (<=127 element) pad / slice tail path.
    x_odd = jax.random.normal(k2, (3, 5, 7, 11), dtype=jnp.float32) * 4.0
    y_odd = jax.block_until_ready(h_swish(x_odd))
    assert y_odd.shape == x_odd.shape and y_odd.dtype == x_odd.dtype
    assert jnp.allclose(y_odd, h_swish_ref(x_odd), atol=1e-6, rtol=1e-6), \
        "mismatch vs reference (odd shape)"

    # bf16 input: bf16 on the wire, f32 math inside the kernel.
    x_bf16 = (jax.random.normal(k3, (2, 4, 16, 16), dtype=jnp.float32) * 4.0
              ).astype(jnp.bfloat16)
    y_bf16 = jax.block_until_ready(h_swish(x_bf16))
    assert y_bf16.shape == x_bf16.shape and y_bf16.dtype == jnp.bfloat16
    assert jnp.allclose(y_bf16.astype(jnp.float32),
                        h_swish_ref(x_bf16).astype(jnp.float32),
                        atol=3e-2, rtol=3e-2), "mismatch vs reference (bf16)"

    # Larger input to exercise the multi-block (grid > 1) pipelined path.
    x_big = jax.random.normal(k4, (2, 8, 512, 512), dtype=jnp.float32) * 4.0
    y_big = jax.block_until_ready(h_swish(x_big))
    assert y_big.shape == x_big.shape and y_big.dtype == x_big.dtype
    assert jnp.allclose(y_big, h_swish_ref(x_big), atol=1e-6, rtol=1e-6), \
        "mismatch vs reference (big, multi-block)"

    print("KERNEL_OK")
</pallas_src>

<mosaic_0001>
module attributes {stable_mosaic.version = 11 : i64} {
  func.func @_h_swish_kernel(%arg0: i32, %arg1: memref<16x128xf32, #tpu.memory_space<vmem>>, %arg2: memref<16x128xf32, #tpu.memory_space<vmem>>) attributes {dimension_semantics = [#tpu.dimension_semantics<parallel>], iteration_bounds = array<i64: 1>, scalar_prefetch = 0 : i64, scratch_operands = 0 : i64, tpu.core_type = #tpu.core_type<tc>, window_params = [{transform_indices = @transform_0, window_bounds = array<i64: 16, 128>}, {transform_indices = @transform_1, window_bounds = array<i64: 16, 128>}]} {
    %c0 = arith.constant 0 : index
    %c0_0 = arith.constant 0 : index
    %0 = vector.load %arg1[%c0, %c0_0] : memref<16x128xf32, #tpu.memory_space<vmem>>, vector<16x128xf32>
    %cst = arith.constant 3.000000e+00 : f32
    %1 = vector.broadcast %cst : f32 to vector<16x128xf32>
    %2 = arith.addf %0, %1 : vector<16x128xf32>
    %cst_1 = arith.constant 0.000000e+00 : f32
    %3 = vector.broadcast %cst_1 : f32 to vector<16x128xf32>
    %4 = arith.maximumf %2, %3 : vector<16x128xf32>
    %cst_2 = arith.constant 6.000000e+00 : f32
    %5 = vector.broadcast %cst_2 : f32 to vector<16x128xf32>
    %6 = arith.minimumf %4, %5 : vector<16x128xf32>
    %cst_3 = arith.constant 0.166666672 : f32
    %7 = vector.broadcast %cst_3 : f32 to vector<16x128xf32>
    %8 = arith.mulf %6, %7 : vector<16x128xf32>
    %9 = arith.mulf %0, %8 : vector<16x128xf32>
    %c0_4 = arith.constant 0 : index
    %c0_5 = arith.constant 0 : index
    %10 = vector.load %arg2[%c0_4, %c0_5] : memref<16x128xf32, #tpu.memory_space<vmem>>, vector<16x128xf32>
    tpu.vector_store %arg2[%c0_4, %c0_5], %9 {strides = array<i32>} : memref<16x128xf32, #tpu.memory_space<vmem>>, vector<16x128xf32>,
    return
  }
  func.func @transform_0(%arg0: i32) -> (i32, i32) {
    %c0_i32 = arith.constant 0 : i32
    %c0_i32_0 = arith.constant 0 : i32
    return %arg0, %c0_i32 : i32, i32
  }
  func.func @transform_1(%arg0: i32) -> (i32, i32) {
    %c0_i32 = arith.constant 0 : i32
    %c0_i32_0 = arith.constant 0 : i32
    return %arg0, %c0_i32 : i32, i32
  }
}

</mosaic_0001>

<bundles_post_ra>
// kernel: tpu_custom_call.1
= control target key start
LH: loop header
LB: loop body
LE: loop exit
PB: predicated region body
PF: predicated region fallthrough
CT: control target
= control target key end

     0   :  { %6 = vsyncpa [#allocation3], 0  ;;  %s150_s0 = inlined_call_operand.hbm [shape: f32[16,128], index: 0, kind: input, shape index: {}]   ;;  %s151_s1 = inlined_call_operand.hbm [shape: f32[16,128], index: 1, kind: output, shape index: {}]  }
   0x1   :  { %7 = vsyncpa [#allocation4], 0  ;;  %s106_s6 = smov [#allocation2]   ;;  %s58_s10 = scalar_lea.hbm %s150_s0, 256 }
   0x2   :  { %s13_s7 = sshll.u32 %s106_s6, 4  ;;  %p59_p0 = scmp.ne.s32.totalorder %s150_s0, %s58_s10  ;;  %s14_s7 = int_to_ptr.vmem [resolvable:$true] %s13_s7 }
   0x3   :  { %p62_p1 = scmp.lt.u32.totalorder %s58_s10, %s150_s0 }
   0x5   :  { %p64_p2 = pnand %p62_p1, %p59_p0 }
   0x7   :  { %67 = shalt.err (!%p64_p2)
}
   0x8   :  { %s68_s15 = scalar_lea.vmem %s14_s7, 256  ;;  %p73_p4 = scmp.lt.s32.totalorder %s14_s7, %s14_s7 }
   0x9   :  { %p69_p3 = scmp.ne.s32.totalorder %s14_s7, %s68_s15  ;;  %p74_p5 = scmp.lt.s32.totalorder %s68_s15, %s68_s15 }
   0xb   :  { %p75_p6 = por %p74_p5, %p73_p4 }
   0xd   :  { %p76_p7 = pnand %p75_p6, %p69_p3 }
   0xf   :  { %79 = shalt.err (!%p76_p7)
}
  0x10   :  { %s107_s16 = smov 128   ;;  %s108_s17 = smov 8  }
  0x11   :  { %19 = dma.hbm_to_vmem [thread:$0]  %s150_s0, 256, %s14_s7, [#allocation3], %s107_s16, %s107_s16, %s108_s17  }
  0x12   :  { %102 = dma.done.wait [#allocation3], 256  }
  0x13   :  { %103 = vsyncadd [#allocation3], 4294967040  ;;  %v23_v0 = vld [vmem:[#allocation2] sm:$0xff]  ;;  %v24_v1 = vld [vmem:[#allocation2 + $0x8] sm:$0xff]  ;;  %s109_s20 = smov [#allocation5]  }
  0x14   :  { %v25_v2 = vadd.f32 3.0, %v23_v0  ;;  %v26_v3 = vadd.f32 3.0, %v24_v1  ;;  %s42_s21 = sshll.u32 %s109_s20, 4  ;;  %s43_s21 = int_to_ptr.vmem [resolvable:$true] %s42_s21 }
  0x15   :  { %s80_s0 = scalar_lea.vmem %s43_s21, 256  ;;  %p85_p9 = scmp.lt.s32.totalorder %s43_s21, %s43_s21 }
  0x16   :  { %v27_v4 = vmax.f32 %v25_v2, 0.0  ;;  %v28_v5 = vmax.f32 %v26_v3, 0.0  ;;  %p81_p8 = scmp.ne.s32.totalorder %s43_s21, %s80_s0  ;;  %p86_p10 = scmp.lt.s32.totalorder %s80_s0, %s80_s0 }
  0x18   :  { %v29_v6 = vmin.f32 %v27_v4, 6.0  ;;  %v30_v7 = vmin.f32 %v28_v5, 6.0  ;;  %p87_p11 = por %p86_p10, %p85_p9 }
  0x1a   :  { %v31_v8 = vmul.f32 0.16666667, %v29_v6  ;;  %v32_v9 = vmul.f32 0.16666667, %v30_v7  ;;  %p88_p12 = pnand %p87_p11, %p81_p8 }
  0x1c   :  { %v33_v10 = vmul.f32 %v31_v8, %v23_v0  ;;  %v34_v11 = vmul.f32 %v32_v9, %v24_v1 }
  0x1e   :  { %35 = vst [vmem:[#allocation5] sm:$0xff] %v33_v10  ;;  %36 = vst [vmem:[#allocation5 + $0x8] sm:$0xff] %v34_v11 }
  0x1f   :  { %91 = shalt.err (!%p88_p12)
}
  0x20   :  { %s92_s24 = scalar_lea.hbm %s151_s1, 256 }
  0x21   :  { %p93_p13 = scmp.ne.s32.totalorder %s151_s1, %s92_s24  ;;  %p96_p0 = scmp.lt.u32.totalorder %s92_s24, %s151_s1 }
  0x23   :  { %p98_p1 = pnand %p96_p0, %p93_p13 }
  0x25   :  { %101 = shalt.err (!%p98_p1)
}
  0x26   :  { %48 = dma.vmem_to_hbm [thread:$0]  %s43_s21, 256, %s151_s1, [#allocation4], %s107_s16, %s107_s16, %s108_s17  }
  0x27   :  { %104 = dma.done.wait [#allocation4], 256  }
  0x28   :  { %105 = vsyncadd [#allocation4], 4294967040 }
  0x29   :  { %52 = vsyncpa [#allocation3], 1 }
  0x2a   :  { %53 = vsyncpa [#allocation4], 1 }

</bundles_post_ra>
